<compile_context>
chip_gen: v7x
topology: tpu7x:2x2x1
jax: 0.10.0
libtpu: 0.0.40
codegen_flags: <defaults>
</compile_context>

<pallas_src>
import functools
import math

import jax
import jax.numpy as jnp
from jax.experimental import pallas as pl
from jax.experimental.pallas import tpu as pltpu


def _harmonic_kernel(x_ref, o_ref, *, in_channels, n_harmonics, include_input,
                     freqs, use_recurrence, chunk):
    """x_ref: (C, tile_n); o_ref: (output_dim, tile_n); freqs: tuple of Python floats."""
    C, H = in_channels, n_harmonics
    CH = C * H
    tile_n = x_ref.shape[-1]

    # Static Python loop over lane chunks: static slices, bounded live ranges,
    # while the BlockSpec tile (and hence the DMA) stays large.
    for start in range(0, tile_n, chunk):
        width = min(chunk, tile_n - start)
        x = x_ref[:, start:start + width].astype(jnp.float32)        # (C, width)

        if use_recurrence:
            # logspace: freq[h] = f0 * 2**h.  One sin/cos per channel, then
            # double-angle: sin(2z) = 2*s*c, cos(2z) = 1 - 2*s^2  (4 VPU ops/step).
            z = x * freqs[0]
            s, c = jnp.sin(z), jnp.cos(z)
            sins, coss = [s], [c]
            for _ in range(1, H):
                s, c = 2.0 * s * c, 1.0 - 2.0 * (s * s)
                sins.append(s)
                coss.append(c)
        else:
            # Exact path (also used for non-logspace frequencies).
            sins = [jnp.sin(x * f) for f in freqs]
            coss = [jnp.cos(x * f) for f in freqs]

        # Assemble channel-major rows (output row = c*H + h) in-register and issue
        # 3 wide stores instead of 2*C small 6-row slab stores.
        sin_all = jnp.concatenate(
            [sins[h][ch:ch + 1, :] for ch in range(C) for h in range(H)], axis=0)
        cos_all = jnp.concatenate(
            [coss[h][ch:ch + 1, :] for ch in range(C) for h in range(H)], axis=0)

        o_ref[0:CH, start:start + width] = sin_all.astype(o_ref.dtype)
        o_ref[CH:2 * CH, start:start + width] = cos_all.astype(o_ref.dtype)
        if include_input:
            o_ref[2 * CH:, start:start + width] = x.astype(o_ref.dtype)


class HarmonicEmbeddingPallas:
    def __init__(self, in_channels: int = 3, n_harmonic_functions: int = 6,
                 omega0: float = 1.0, logspace: bool = True,
                 include_input: bool = True, use_recurrence: bool | None = None):
        if logspace:
            base = [2.0 ** i for i in range(n_harmonic_functions)]
        else:
            lo, hi = 1.0, 2.0 ** (n_harmonic_functions - 1)
            if n_harmonic_functions == 1:
                base = [lo]
            else:
                step = (hi - lo) / (n_harmonic_functions - 1)
                base = [lo + i * step for i in range(n_harmonic_functions)]
        # Python float immediates -> lowered as scalar constants inside the kernel.
        self._freqs = tuple(float(omega0) * float(f) for f in base)
        # jnp copy only for the host-side reference check.
        self.frequencies = jnp.asarray(self._freqs, dtype=jnp.float32)

        self.in_channels = in_channels
        self.n_harmonic_functions = n_harmonic_functions
        self.include_input = include_input
        # Double-angle recurrence is only exact for 2^k (logspace) frequencies.
        self.use_recurrence = (logspace if use_recurrence is None
                               else (use_recurrence and logspace))
        self.output_dim = n_harmonic_functions * 2 * in_channels
        if include_input:
            self.output_dim += in_channels

    def __call__(self, x, *, tile_n: int = 16384, inner_chunk: int = 2048,
                 feature_major_output: bool = False, out_dtype=None):
        lead_shape = x.shape[:-1]
        C = x.shape[-1]
        assert C == self.in_channels
        n_rows = int(math.prod(lead_shape)) if lead_shape else 1
        out_dtype = x.dtype if out_dtype is None else out_dtype

        # Feature-major layout: points become the 128-wide lane dimension.
        xt = x.reshape(n_rows, C).T                              # (C, N)

        def round_up(v, m):
            return ((v + m - 1) // m) * m

        # tile_n: multiple of 128, no larger than (rounded) N, and small enough that
        # the grid has >= 2 blocks when N >= 256 (both v7x TensorCores get work).
        tile_n = max(128, min((int(tile_n) // 128) * 128, round_up(n_rows, 128)))
        if n_rows >= 256:
            tile_n = min(tile_n, round_up((n_rows + 1) // 2, 128))
        n_blocks = pl.cdiv(n_rows, tile_n)

        chunk = max(128, min((int(inner_chunk) // 128) * 128, tile_n))

        kernel = functools.partial(
            _harmonic_kernel,
            in_channels=C,
            n_harmonics=self.n_harmonic_functions,
            include_input=self.include_input,
            freqs=self._freqs,
            use_recurrence=self.use_recurrence,
            chunk=chunk,
        )

        out_t = pl.pallas_call(
            kernel,
            out_shape=jax.ShapeDtypeStruct((self.output_dim, n_rows), out_dtype),
            grid_spec=pltpu.PrefetchScalarGridSpec(
                num_scalar_prefetch=0,
                grid=(n_blocks,),
                in_specs=[pl.BlockSpec((C, tile_n), lambda i: (0, i))],
                out_specs=pl.BlockSpec((self.output_dim, tile_n),
                                       lambda i: (0, i)),
            ),
            compiler_params=pltpu.CompilerParams(
                dimension_semantics=("parallel",)),
        )(xt)

        if feature_major_output:
            # (output_dim, N): no wrapper transpose, zero extra HBM traffic.
            return out_t
        # Canonical (..., output_dim) layout.  The transpose stays outside the
        # kernel so XLA can fuse it into the consumer under jit.
        return out_t.T.reshape(*lead_shape, self.output_dim)


def _reference(x, frequencies, include_input):
    freqs = jnp.asarray(frequencies, dtype=jnp.float32)
    embed = (x[..., None] * freqs).reshape(*x.shape[:-1], -1)
    pieces = [jnp.sin(embed), jnp.cos(embed)]
    if include_input:
        pieces.append(x)
    return jnp.concatenate(pieces, axis=-1)


if __name__ == "__main__":
    key = jax.random.PRNGKey(0)
    # NeRF-style point batch: (batch, n_pts, 3).  N=200 also exercises the ragged
    # (non-multiple-of-128) last block path.
    x = jax.random.normal(key, (2, 100, 3), dtype=jnp.float32)

    module = HarmonicEmbeddingPallas(in_channels=3, n_harmonic_functions=6,
                                     omega0=1.0, logspace=True, include_input=True)
    ref = _reference(x, module.frequencies, module.include_input)

    # Default path: double-angle recurrence (a few ulp of error per doubling, hence
    # the slightly looser tolerance -- see the review's correctness note).
    out = jax.block_until_ready(module(x))
    assert out.shape == (2, 100, module.output_dim), out.shape
    assert jnp.allclose(out, ref, atol=3e-5, rtol=1e-5), \
        float(jnp.max(jnp.abs(out - ref)))

    # Exact per-harmonic sin/cos path meets the tight tolerance.
    module_exact = HarmonicEmbeddingPallas(use_recurrence=False)
    out_exact = jax.block_until_ready(module_exact(x))
    assert jnp.allclose(out_exact, ref, atol=1e-5, rtol=1e-5), \
        float(jnp.max(jnp.abs(out_exact - ref)))

    # Feature-major output path (no wrapper transpose) matches bit-for-bit.
    out_fm = jax.block_until_ready(module(x, feature_major_output=True))
    assert out_fm.shape == (module.output_dim, 200), out_fm.shape
    assert jnp.array_equal(out_fm.T.reshape(2, 100, -1), out)

    print("KERNEL_OK")
</pallas_src>

<mosaic_0001>
module attributes {stable_mosaic.version = 11 : i64} {
  func.func @_harmonic_kernel(%arg0: i32, %arg1: memref<3x256xf32, #tpu.memory_space<vmem>>, %arg2: memref<39x256xf32, #tpu.memory_space<vmem>>) attributes {dimension_semantics = [#tpu.dimension_semantics<parallel>], iteration_bounds = array<i64: 1>, scalar_prefetch = 0 : i64, scratch_operands = 0 : i64, tpu.core_type = #tpu.core_type<tc>, window_params = [{transform_indices = @transform_0, window_bounds = array<i64: 3, 256>}, {transform_indices = @transform_1, window_bounds = array<i64: 39, 256>}]} {
    %c0 = arith.constant 0 : index
    %c0_0 = arith.constant 0 : index
    %0 = vector.load %arg1[%c0, %c0_0] : memref<3x256xf32, #tpu.memory_space<vmem>>, vector<3x256xf32>
    %cst = arith.constant 1.000000e+00 : f32
    %1 = vector.broadcast %cst : f32 to vector<3x256xf32>
    %2 = arith.mulf %0, %1 : vector<3x256xf32>
    %3 = math.sin %2 : vector<3x256xf32>
    %4 = math.cos %2 : vector<3x256xf32>
    %cst_1 = arith.constant 2.000000e+00 : f32
    %5 = vector.broadcast %cst_1 : f32 to vector<3x256xf32>
    %6 = arith.mulf %5, %3 : vector<3x256xf32>
    %7 = arith.mulf %6, %4 : vector<3x256xf32>
    %8 = arith.mulf %3, %3 : vector<3x256xf32>
    %cst_2 = arith.constant 2.000000e+00 : f32
    %9 = vector.broadcast %cst_2 : f32 to vector<3x256xf32>
    %10 = arith.mulf %9, %8 : vector<3x256xf32>
    %cst_3 = arith.constant 1.000000e+00 : f32
    %11 = vector.broadcast %cst_3 : f32 to vector<3x256xf32>
    %12 = arith.subf %11, %10 : vector<3x256xf32>
    %cst_4 = arith.constant 2.000000e+00 : f32
    %13 = vector.broadcast %cst_4 : f32 to vector<3x256xf32>
    %14 = arith.mulf %13, %7 : vector<3x256xf32>
    %15 = arith.mulf %14, %12 : vector<3x256xf32>
    %16 = arith.mulf %7, %7 : vector<3x256xf32>
    %cst_5 = arith.constant 2.000000e+00 : f32
    %17 = vector.broadcast %cst_5 : f32 to vector<3x256xf32>
    %18 = arith.mulf %17, %16 : vector<3x256xf32>
    %cst_6 = arith.constant 1.000000e+00 : f32
    %19 = vector.broadcast %cst_6 : f32 to vector<3x256xf32>
    %20 = arith.subf %19, %18 : vector<3x256xf32>
    %cst_7 = arith.constant 2.000000e+00 : f32
    %21 = vector.broadcast %cst_7 : f32 to vector<3x256xf32>
    %22 = arith.mulf %21, %15 : vector<3x256xf32>
    %23 = arith.mulf %22, %20 : vector<3x256xf32>
    %24 = arith.mulf %15, %15 : vector<3x256xf32>
    %cst_8 = arith.constant 2.000000e+00 : f32
    %25 = vector.broadcast %cst_8 : f32 to vector<3x256xf32>
    %26 = arith.mulf %25, %24 : vector<3x256xf32>
    %cst_9 = arith.constant 1.000000e+00 : f32
    %27 = vector.broadcast %cst_9 : f32 to vector<3x256xf32>
    %28 = arith.subf %27, %26 : vector<3x256xf32>
    %cst_10 = arith.constant 2.000000e+00 : f32
    %29 = vector.broadcast %cst_10 : f32 to vector<3x256xf32>
    %30 = arith.mulf %29, %23 : vector<3x256xf32>
    %31 = arith.mulf %30, %28 : vector<3x256xf32>
    %32 = arith.mulf %23, %23 : vector<3x256xf32>
    %cst_11 = arith.constant 2.000000e+00 : f32
    %33 = vector.broadcast %cst_11 : f32 to vector<3x256xf32>
    %34 = arith.mulf %33, %32 : vector<3x256xf32>
    %cst_12 = arith.constant 1.000000e+00 : f32
    %35 = vector.broadcast %cst_12 : f32 to vector<3x256xf32>
    %36 = arith.subf %35, %34 : vector<3x256xf32>
    %cst_13 = arith.constant 2.000000e+00 : f32
    %37 = vector.broadcast %cst_13 : f32 to vector<3x256xf32>
    %38 = arith.mulf %37, %31 : vector<3x256xf32>
    %39 = arith.mulf %38, %36 : vector<3x256xf32>
    %40 = arith.mulf %31, %31 : vector<3x256xf32>
    %cst_14 = arith.constant 2.000000e+00 : f32
    %41 = vector.broadcast %cst_14 : f32 to vector<3x256xf32>
    %42 = arith.mulf %41, %40 : vector<3x256xf32>
    %cst_15 = arith.constant 1.000000e+00 : f32
    %43 = vector.broadcast %cst_15 : f32 to vector<3x256xf32>
    %44 = arith.subf %43, %42 : vector<3x256xf32>
    %45 = vector.extract_strided_slice %3 {offsets = [0, 0], sizes = [1, 256], strides = [1, 1]} : vector<3x256xf32> to vector<1x256xf32>
    %46 = vector.extract_strided_slice %7 {offsets = [0, 0], sizes = [1, 256], strides = [1, 1]} : vector<3x256xf32> to vector<1x256xf32>
    %47 = vector.extract_strided_slice %15 {offsets = [0, 0], sizes = [1, 256], strides = [1, 1]} : vector<3x256xf32> to vector<1x256xf32>
    %48 = vector.extract_strided_slice %23 {offsets = [0, 0], sizes = [1, 256], strides = [1, 1]} : vector<3x256xf32> to vector<1x256xf32>
    %49 = vector.extract_strided_slice %31 {offsets = [0, 0], sizes = [1, 256], strides = [1, 1]} : vector<3x256xf32> to vector<1x256xf32>
    %50 = vector.extract_strided_slice %39 {offsets = [0, 0], sizes = [1, 256], strides = [1, 1]} : vector<3x256xf32> to vector<1x256xf32>
    %51 = vector.extract_strided_slice %3 {offsets = [1, 0], sizes = [1, 256], strides = [1, 1]} : vector<3x256xf32> to vector<1x256xf32>
    %52 = vector.extract_strided_slice %7 {offsets = [1, 0], sizes = [1, 256], strides = [1, 1]} : vector<3x256xf32> to vector<1x256xf32>
    %53 = vector.extract_strided_slice %15 {offsets = [1, 0], sizes = [1, 256], strides = [1, 1]} : vector<3x256xf32> to vector<1x256xf32>
    %54 = vector.extract_strided_slice %23 {offsets = [1, 0], sizes = [1, 256], strides = [1, 1]} : vector<3x256xf32> to vector<1x256xf32>
    %55 = vector.extract_strided_slice %31 {offsets = [1, 0], sizes = [1, 256], strides = [1, 1]} : vector<3x256xf32> to vector<1x256xf32>
    %56 = vector.extract_strided_slice %39 {offsets = [1, 0], sizes = [1, 256], strides = [1, 1]} : vector<3x256xf32> to vector<1x256xf32>
    %57 = vector.extract_strided_slice %3 {offsets = [2, 0], sizes = [1, 256], strides = [1, 1]} : vector<3x256xf32> to vector<1x256xf32>
    %58 = vector.extract_strided_slice %7 {offsets = [2, 0], sizes = [1, 256], strides = [1, 1]} : vector<3x256xf32> to vector<1x256xf32>
    %59 = vector.extract_strided_slice %15 {offsets = [2, 0], sizes = [1, 256], strides = [1, 1]} : vector<3x256xf32> to vector<1x256xf32>
    %60 = vector.extract_strided_slice %23 {offsets = [2, 0], sizes = [1, 256], strides = [1, 1]} : vector<3x256xf32> to vector<1x256xf32>
    %61 = vector.extract_strided_slice %31 {offsets = [2, 0], sizes = [1, 256], strides = [1, 1]} : vector<3x256xf32> to vector<1x256xf32>
    %62 = vector.extract_strided_slice %39 {offsets = [2, 0], sizes = [1, 256], strides = [1, 1]} : vector<3x256xf32> to vector<1x256xf32>
    %63 = tpu.concatenate %45, %46, %47, %48, %49, %50, %51, %52, %53, %54, %55, %56, %57, %58, %59, %60 in 0 : vector<1x256xf32>, vector<1x256xf32>, vector<1x256xf32>, vector<1x256xf32>, vector<1x256xf32>, vector<1x256xf32>, vector<1x256xf32>, vector<1x256xf32>, vector<1x256xf32>, vector<1x256xf32>, vector<1x256xf32>, vector<1x256xf32>, vector<1x256xf32>, vector<1x256xf32>, vector<1x256xf32>, vector<1x256xf32> -> vector<16x256xf32>
    %64 = tpu.concatenate %61, %62 in 0 : vector<1x256xf32>, vector<1x256xf32> -> vector<2x256xf32>
    %65 = tpu.concatenate %63, %64 in 0 : vector<16x256xf32>, vector<2x256xf32> -> vector<18x256xf32>
    %66 = vector.extract_strided_slice %4 {offsets = [0, 0], sizes = [1, 256], strides = [1, 1]} : vector<3x256xf32> to vector<1x256xf32>
    %67 = vector.extract_strided_slice %12 {offsets = [0, 0], sizes = [1, 256], strides = [1, 1]} : vector<3x256xf32> to vector<1x256xf32>
    %68 = vector.extract_strided_slice %20 {offsets = [0, 0], sizes = [1, 256], strides = [1, 1]} : vector<3x256xf32> to vector<1x256xf32>
    %69 = vector.extract_strided_slice %28 {offsets = [0, 0], sizes = [1, 256], strides = [1, 1]} : vector<3x256xf32> to vector<1x256xf32>
    %70 = vector.extract_strided_slice %36 {offsets = [0, 0], sizes = [1, 256], strides = [1, 1]} : vector<3x256xf32> to vector<1x256xf32>
    %71 = vector.extract_strided_slice %44 {offsets = [0, 0], sizes = [1, 256], strides = [1, 1]} : vector<3x256xf32> to vector<1x256xf32>
    %72 = vector.extract_strided_slice %4 {offsets = [1, 0], sizes = [1, 256], strides = [1, 1]} : vector<3x256xf32> to vector<1x256xf32>
    %73 = vector.extract_strided_slice %12 {offsets = [1, 0], sizes = [1, 256], strides = [1, 1]} : vector<3x256xf32> to vector<1x256xf32>
    %74 = vector.extract_strided_slice %20 {offsets = [1, 0], sizes = [1, 256], strides = [1, 1]} : vector<3x256xf32> to vector<1x256xf32>
    %75 = vector.extract_strided_slice %28 {offsets = [1, 0], sizes = [1, 256], strides = [1, 1]} : vector<3x256xf32> to vector<1x256xf32>
    %76 = vector.extract_strided_slice %36 {offsets = [1, 0], sizes = [1, 256], strides = [1, 1]} : vector<3x256xf32> to vector<1x256xf32>
    %77 = vector.extract_strided_slice %44 {offsets = [1, 0], sizes = [1, 256], strides = [1, 1]} : vector<3x256xf32> to vector<1x256xf32>
    %78 = vector.extract_strided_slice %4 {offsets = [2, 0], sizes = [1, 256], strides = [1, 1]} : vector<3x256xf32> to vector<1x256xf32>
    %79 = vector.extract_strided_slice %12 {offsets = [2, 0], sizes = [1, 256], strides = [1, 1]} : vector<3x256xf32> to vector<1x256xf32>
    %80 = vector.extract_strided_slice %20 {offsets = [2, 0], sizes = [1, 256], strides = [1, 1]} : vector<3x256xf32> to vector<1x256xf32>
    %81 = vector.extract_strided_slice %28 {offsets = [2, 0], sizes = [1, 256], strides = [1, 1]} : vector<3x256xf32> to vector<1x256xf32>
    %82 = vector.extract_strided_slice %36 {offsets = [2, 0], sizes = [1, 256], strides = [1, 1]} : vector<3x256xf32> to vector<1x256xf32>
    %83 = vector.extract_strided_slice %44 {offsets = [2, 0], sizes = [1, 256], strides = [1, 1]} : vector<3x256xf32> to vector<1x256xf32>
    %84 = tpu.concatenate %66, %67, %68, %69, %70, %71, %72, %73, %74, %75, %76, %77, %78, %79, %80, %81 in 0 : vector<1x256xf32>, vector<1x256xf32>, vector<1x256xf32>, vector<1x256xf32>, vector<1x256xf32>, vector<1x256xf32>, vector<1x256xf32>, vector<1x256xf32>, vector<1x256xf32>, vector<1x256xf32>, vector<1x256xf32>, vector<1x256xf32>, vector<1x256xf32>, vector<1x256xf32>, vector<1x256xf32>, vector<1x256xf32> -> vector<16x256xf32>
    %85 = tpu.concatenate %82, %83 in 0 : vector<1x256xf32>, vector<1x256xf32> -> vector<2x256xf32>
    %86 = tpu.concatenate %84, %85 in 0 : vector<16x256xf32>, vector<2x256xf32> -> vector<18x256xf32>
    %c0_16 = arith.constant 0 : index
    %c0_17 = arith.constant 0 : index
    %87 = vector.load %arg2[%c0_16, %c0_17] : memref<39x256xf32, #tpu.memory_space<vmem>>, vector<18x256xf32>
    tpu.vector_store %arg2[%c0_16, %c0_17], %65 {strides = array<i32>} : memref<39x256xf32, #tpu.memory_space<vmem>>, vector<18x256xf32>,
    %c18 = arith.constant 18 : index
    %c0_18 = arith.constant 0 : index
    %88 = vector.load %arg2[%c18, %c0_18] : memref<39x256xf32, #tpu.memory_space<vmem>>, vector<18x256xf32>
    tpu.vector_store %arg2[%c18, %c0_18], %86 {strides = array<i32>} : memref<39x256xf32, #tpu.memory_space<vmem>>, vector<18x256xf32>,
    %c36 = arith.constant 36 : index
    %c0_19 = arith.constant 0 : index
    %89 = vector.load %arg2[%c36, %c0_19] : memref<39x256xf32, #tpu.memory_space<vmem>>, vector<3x256xf32>
    tpu.vector_store %arg2[%c36, %c0_19], %0 {strides = array<i32>} : memref<39x256xf32, #tpu.memory_space<vmem>>, vector<3x256xf32>,
    return
  }
  func.func @transform_0(%arg0: i32) -> (i32, i32) {
    %c0_i32 = arith.constant 0 : i32
    %c0_i32_0 = arith.constant 0 : i32
    return %c0_i32, %arg0 : i32, i32
  }
  func.func @transform_1(%arg0: i32) -> (i32, i32) {
    %c0_i32 = arith.constant 0 : i32
    %c0_i32_0 = arith.constant 0 : i32
    return %c0_i32, %arg0 : i32, i32
  }
}

</mosaic_0001>

<bundles_post_ra>
// kernel: tpu_custom_call.1
= control target key start
LH: loop header
LB: loop body
LE: loop exit
PB: predicated region body
PF: predicated region fallthrough
CT: control target
= control target key end

     0   :  { %6 = vsyncpa [#allocation3], 0  ;;  %s1180_s0 = inlined_call_operand.hbm [shape: f32[3,200], index: 0, kind: input, shape index: {}]   ;;  %s1181_s1 = inlined_call_operand.hbm [shape: f32[39,200], index: 1, kind: output, shape index: {}]  }
   0x1   :  { %7 = vsyncpa [#allocation4], 0  ;;  %s824_s6 = smov [#allocation2]   ;;  %s776_s10 = scalar_lea.hbm %s1180_s0, 128 }
   0x2   :  { %s14_s7 = sshll.u32 %s824_s6, 4  ;;  %p777_p0 = scmp.ne.s32.totalorder %s1180_s0, %s776_s10  ;;  %s15_s7 = int_to_ptr.vmem [resolvable:$true] %s14_s7 }
   0x3   :  { %p780_p1 = scmp.lt.u32.totalorder %s776_s10, %s1180_s0 }
   0x5   :  { %p782_p2 = pnand %p780_p1, %p777_p0 }
   0x7   :  { %785 = shalt.err (!%p782_p2)
}
   0x8   :  { %s786_s15 = scalar_lea.vmem %s15_s7, 128  ;;  %p791_p4 = scmp.lt.s32.totalorder %s15_s7, %s15_s7 }
   0x9   :  { %p787_p3 = scmp.ne.s32.totalorder %s15_s7, %s786_s15  ;;  %p792_p5 = scmp.lt.s32.totalorder %s786_s15, %s786_s15 }
   0xb   :  { %p793_p6 = por %p792_p5, %p791_p4 }
   0xd   :  { %p794_p7 = pnand %p793_p6, %p787_p3 }
   0xf   :  { %797 = shalt.err (!%p794_p7)
}
  0x10   :  { %17 = dma.hbm_to_vmem [thread:$0]  %s1180_s0, 128, %s15_s7, [#allocation3]  }
  0x11   :  { %820 = dma.done.wait [#allocation3], 128  }
  0x12   :  { %821 = vsyncadd [#allocation3], 4294967168  ;;  %v856_v0 = vld [vmem:[#allocation2] sm:$0x77]  ;;  %v825_v13 = vmov 683565275  }
  0x13   :  { %v25_v1 = vand.u32 2139095040, %v856_v0  ;;  %731 = vst [vmem:[#allocation5 + $0x48] sm:$0x70] %v856_v0  ;;  %v728_v2 = vcombine.low %v856_v0, %v856_v0  ;;  %v22_v4 = vand.u32 2147483647, %v856_v0  ;;  %vm24_vm7 = vcmp.lt.s32.totalorder %v856_v0, 0 }
  0x14   :  { %v826_v15 = vmov 2475754826   ;;  %v827_v17 = vmov 2131351028   ;;  %v828_v19 = vmov 2102212464   ;;  %vm114_vm15 = vweird.f32 %v856_v0 }
  0x15   :  { %v26_v3 = vshrl.u32 %v25_v1, 23  ;;  %730 = vst [vmem:[#allocation5 + $0x40] sm:$0x70] %v728_v2  ;;  %v29_v7 = vand.u32 8388607, %v22_v4  ;;  %s831_s0 = smov [#allocation5]  }
  0x16   :  { %v829_v21 = vmov 920167782   ;;  %v830_v28 = vmov 1326507024   ;;  %vm23_vm8 = vcmp.le.f32.partialorder %v22_v4, 0.7853982 }
  0x17   :  { %v749_v5 = vadd.s32 4294967169, %v26_v3  ;;  %v30_v10 = vor.u32 8388608, %v29_v7  ;;  %s737_s18 = sshll.u32 %s831_s0, 4  ;;  %s738_s18 = int_to_ptr.vmem [resolvable:$true] %s737_s18 }
  0x18   :  { %s798_s19 = scalar_lea.vmem %s738_s18, 1280  ;;  %p803_p9 = scmp.lt.s32.totalorder %s738_s18, %s738_s18 }
  0x19   :  { %v32_v6 = vadd.s32 1, %v749_v5  ;;  %v70_v30 = vshll.u32 %v30_v10, 8  ;;  %p799_p8 = scmp.ne.s32.totalorder %s738_s18, %s798_s19  ;;  %p804_p10 = scmp.lt.s32.totalorder %s798_s19, %s798_s19 }
  0x1b   :  { %vm33_vm0 = vcmp.gt.s32.totalorder %v32_v6, 0  ;;  %p805_p11 = por %p804_p10, %p803_p9 }
  0x1c   :  { %v34_v8 = vsel %vm33_vm0, %v32_v6, 0  ;;  %vm420_vm0 = vcmask 1040384  }
  0x1d   :  { %v36_v9 = vand.u32 31, %v34_v8  ;;  %v35_v11 = vshrl.u32 %v34_v8, 5  ;;  %p806_p12 = pnand %p805_p11, %p799_p8 }
  0x1f   :  { %v37_v12 = vsub.s32 32, %v36_v9  ;;  %v39_v14 = vshll.u32 %v825_v13, %v36_v9  ;;  %v42_v16 = vshll.u32 %v826_v15, %v36_v9  ;;  %v45_v18 = vshll.u32 %v827_v17, %v36_v9 }
  0x20   :  { %v48_v20 = vshll.u32 %v828_v19, %v36_v9  ;;  %v51_v22 = vshll.u32 %v829_v21, %v36_v9  ;;  %vm54_vm1 = vcmp.lt.s32.totalorder %v35_v11, 1  ;;  %vm57_vm2 = vcmp.lt.s32.totalorder %v35_v11, 4 }
  0x21   :  { %v38_v23 = vshrl.u32 %v825_v13, %v37_v12  ;;  %v40_v24 = vshrl.u32 %v826_v15, %v37_v12  ;;  %v43_v25 = vshrl.u32 %v827_v17, %v37_v12  ;;  %v46_v26 = vshrl.u32 %v828_v19, %v37_v12 }
  0x22   :  { %v49_v27 = vshrl.u32 %v829_v21, %v37_v12  ;;  %v52_v29 = vshrl.u32 %v830_v28, %v37_v12  ;;  %vm55_vm3 = vcmp.lt.s32.totalorder %v35_v11, 2  ;;  %vm56_vm4 = vcmp.lt.s32.totalorder %v35_v11, 3 }
  0x23   :  { %v41_v31 = vor.u32 %v40_v24, %v39_v14  ;;  %v44_v32 = vor.u32 %v43_v25, %v42_v16  ;;  %v47_v33 = vor.u32 %v46_v26, %v45_v18  ;;  %v255_v24 = vlaneseq }
  0x24   :  { %v50_v34 = vor.u32 %v49_v27, %v48_v20  ;;  %v53_v35 = vor.u32 %v52_v29, %v51_v22 }
  0x25   :  { %v58_v36 = vsel %vm54_vm1, %v38_v23, %v41_v31  ;;  %v59_v37 = vsel %vm57_vm2, %v47_v33, 2102212464  ;;  %v62_v38 = vsel %vm54_vm1, %v41_v31, %v44_v32  ;;  %v66_v39 = vsel %vm54_vm1, %v44_v32, %v47_v33 }
  0x26   :  { %v60_v40 = vsel %vm56_vm4, %v44_v32, %v59_v37  ;;  %v63_v41 = vsel %vm57_vm2, %v50_v34, 920167782  ;;  %v67_v42 = vsel %vm57_vm2, %v53_v35, 1326507024  ;;  %v256_v26 = vshrl.u32 %v255_v24, 7 }
  0x27   :  { %v64_v43 = vsel %vm56_vm4, %v47_v33, %v63_v41  ;;  %v68_v44 = vsel %vm56_vm4, %v50_v34, %v67_v42  ;;  %v61_v45 = vsel %vm55_vm3, %v58_v36, %v60_v40  ;;  %vm423_vm1 = vcmask 1041408  }
  0x28   :  { %v65_v46 = vsel %vm55_vm3, %v62_v38, %v64_v43  ;;  %v69_v47 = vsel %vm55_vm3, %v66_v39, %v68_v44  ;;  %v77_v52 = vmul.u32 %v70_v30, %v61_v45  ;;  %v880_v33 = vsub.s32 0, %v256_v26 }
  0x29   :  { %v865_v48 = vmul.u32.u64.low %v70_v30, %v69_v47  ;;  %v866_v49 = vmul.u32.u64.high %v70_v30, %v69_v47, %v865_v48  ;;  %v868_v50 = vmul.u32.u64.low %v70_v30, %v65_v46  ;;  %v869_v51 = vmul.u32.u64.high %v70_v30, %v65_v46, %v868_v50 }
  0x2a   :  { %v882_v36 = vsub.s32 1, %v256_v26  ;;  %v884_v37 = vsub.s32 4, %v256_v26  ;;  %v890_v40 = vsub.s32 5, %v256_v26  ;;  %v899_v44 = vsub.s32 6, %v256_v26 }
  0x2b   :  { %vm79_vm5 = vc.u32 %v866_v49, %v868_v50  ;;  %v80_v53 = vadd.s32 1, %v869_v51  ;;  %v78_v1 = vadd.s32 %v868_v50, %v866_v49  ;;  %vm426_vm2 = vcmask 1042432  }
  0x2c   :  { %vm429_vm3 = vcmask 1043456   ;;  %vm432_vm4 = vcmask 1044480  }
  0x2d   :  { %v81_v54 = vsel %vm79_vm5, %v80_v53, %v869_v51  ;;  %vm435_vm5 = vcmask 1045504  }
  0x2e   :  { %v82_v55 = vadd.s32 %v81_v54, %v77_v52 }
  0x30   :  { %v83_v56 = vadd.s32 536870912, %v82_v55 }
  0x32   :  { %v84_v57 = vshrl.u32 %v83_v56, 30 }
  0x34   :  { %v85_v58 = vshll.u32 %v84_v57, 30  ;;  %v108_v14 = vsub.s32 4, %v84_v57 }
  0x36   :  { %v86_v59 = vsub.s32 %v82_v55, %v85_v58  ;;  %v109_v17 = vsel %vm24_vm7, %v108_v14, %v84_v57 }
  0x37   :  { %v111_v20 = vsel %vm23_vm8, 0, %v109_v17 }
  0x38   :  { %v88_v60 = vsub.s32 0, %v86_v59  ;;  %v115_v21 = vadd.s32 3, %v111_v20  ;;  %v219_v23 = vand.u32 3, %v111_v20 }
  0x3a   :  { %v750_v61 = vmin.u32 %v88_v60, %v86_v59  ;;  %v116_v22 = vand.u32 3, %v115_v21  ;;  %vm224_vm10 = vcmp.eq.s32.totalorder %v219_v23, 2  ;;  %vm221_vm12 = vcmp.eq.s32.totalorder %v219_v23, 0 }
  0x3b   :  { %vm220_vm14 = vcmp.lt.s32.totalorder %v219_v23, 2 }
  0x3c   :  { %v90_v62 = vclz %v750_v61  ;;  %vm121_vm9 = vcmp.eq.s32.totalorder %v116_v22, 2  ;;  %vm118_vm11 = vcmp.eq.s32.totalorder %v116_v22, 0  ;;  %vm117_vm13 = vcmp.lt.s32.totalorder %v116_v22, 2 }
  0x3e   :  { %v751_v63 = vadd.s32 4294967294, %v90_v62 }
  0x40   :  { %vm752_vm6 = vcmp.lt.s32.totalorder %v751_v63, 0 }
  0x41   :  { %v93_v2 = vsel %vm752_vm6, 0, %v751_v63  ;;  %vm438_vm6 = vcmask 1046528  }
  0x42   :  { %v94_v3 = vsub.s32 32, %v93_v2  ;;  %v95_v5 = vshll.u32 %v86_v59, %v93_v2  ;;  %v98_v6 = vsub.s32 4294967266, %v93_v2 }
  0x44   :  { %v96_v7 = vshrl.u32 %v78_v1, %v94_v3  ;;  %v99_v8 = vadd.s32 127, %v98_v6 }
  0x46   :  { %v97_v9 = vor.u32 %v96_v7, %v95_v5  ;;  %v100_v10 = vshll.u32 %v99_v8, 23 }
  0x48   :  { %v101_v11 = vor.u32 4788187, %v100_v10  ;;  %v104_v12 = vcvt.s32.f32 %v97_v9 }
  0x4a   :  { %v102_v13 = vand.u32 2147483647, %v101_v11 }
  0x4c   :  { %v105_v15 = vmul.f32 %v104_v12, %v102_v13 }
  0x4e   :  { %v106_v16 = vxor.u32 2147483648, %v105_v15 }
  0x50   :  { %v107_v18 = vsel %vm24_vm7, %v106_v16, %v105_v15 }
  0x51   :  { %v110_v19 = vsel %vm23_vm8, %v856_v0, %v107_v18  ;;  %v892_v0 = vsub.s32 2, %v256_v26 }
  0x52   :  { %772 = vcosq.f32 %v110_v19 }
  0x53   :  { %774 = vsinq.f32 %v110_v19 }
  0x5c   :  { %v773_v25 = vpop.eup %772 }
  0x5d   :  { %v775_v27 = vpop.eup %774  ;;  %v122_v28 = vxor.u32 2147483648, %v773_v25 }
  0x5e   :  { %v119_v4 = vxor.u32 2147483648, %v775_v27 }
  0x5f   :  { %v123_v29 = vsel %vm121_vm9, %v122_v28, %v775_v27  ;;  %v226_v30 = vsel %vm224_vm10, %v122_v28, %v775_v27 }
  0x60   :  { %v120_v31 = vsel %vm118_vm11, %v773_v25, %v119_v4  ;;  %v223_v32 = vsel %vm221_vm12, %v773_v25, %v119_v4 }
  0x61   :  { %v124_v34 = vsel %vm117_vm13, %v120_v31, %v123_v29  ;;  %v227_v35 = vsel %vm220_vm14, %v223_v32, %v226_v30 }
  0x62   :  { %v886_v38 = vsel %vm114_vm15, nan, %v124_v34  ;;  %v888_v39 = vsel %vm114_vm15, nan, %v227_v35 }
  0x63   :  { %v229_v41 = vmul.f32 2.0, %v886_v38  ;;  %v231_v42 = vmul.f32 %v886_v38, %v886_v38  ;;  %v258_v43 = vrot.slane %v886_v38, %v880_v33  ;;  %v323_v45 = vrot.slane %v886_v38, %v882_v36 }
  0x64   :  { %v262_v46 = vrot.slane %v886_v38, %v884_v37  ;;  %v327_v47 = vrot.slane %v886_v38, %v890_v40  ;;  %v383_v48 = vrot.slane %v886_v38, %v892_v0  ;;  %v387_v51 = vrot.slane %v886_v38, %v899_v44 }
  0x65   :  { %v910_v49 = vmul.f32 %v229_v41, %v888_v39  ;;  %v232_v50 = vmul.f32 2.0, %v231_v42  ;;  %v481_v52 = vrot.slane %v888_v39, %v880_v33  ;;  %v546_v53 = vrot.slane %v888_v39, %v882_v36 }
  0x66   :  { %v485_v54 = vrot.slane %v888_v39, %v884_v37  ;;  %v550_v55 = vrot.slane %v888_v39, %v890_v40  ;;  %v606_v56 = vrot.slane %v888_v39, %v892_v0 }
  0x67   :  { %v924_v57 = vsub.f32 1.0, %v232_v50  ;;  %v234_v58 = vmul.f32 2.0, %v910_v49  ;;  %v236_v59 = vmul.f32 %v910_v49, %v910_v49  ;;  %v269_v60 = vrot.slane %v910_v49, %v880_v33 }
  0x68   :  { %v333_v61 = vrot.slane %v910_v49, %v882_v36  ;;  %v273_v62 = vrot.slane %v910_v49, %v884_v37  ;;  %v337_v63 = vrot.slane %v910_v49, %v890_v40  ;;  %v393_v1 = vrot.slane %v910_v49, %v892_v0 }
  0x69   :  { %v940_v2 = vmul.f32 %v234_v58, %v924_v57  ;;  %v237_v3 = vmul.f32 2.0, %v236_v59  ;;  %v421_v5 = vsel %vm420_vm0, %v258_v43, %v269_v60  ;;  %v397_v6 = vrot.slane %v910_v49, %v899_v44 }
  0x6a   :  { %v422_v7 = vsel %vm420_vm0, %v262_v46, %v273_v62  ;;  %v492_v8 = vrot.slane %v924_v57, %v880_v33  ;;  %v556_v9 = vrot.slane %v924_v57, %v882_v36  ;;  %v496_v10 = vrot.slane %v924_v57, %v884_v37 }
  0x6b   :  { %v952_v11 = vsub.f32 1.0, %v237_v3  ;;  %v239_v12 = vmul.f32 2.0, %v940_v2  ;;  %v241_v13 = vmul.f32 %v940_v2, %v940_v2  ;;  %v280_v14 = vrot.slane %v940_v2, %v880_v33 }
  0x6c   :  { %v284_v15 = vrot.slane %v940_v2, %v884_v37  ;;  %v343_v16 = vrot.slane %v940_v2, %v882_v36  ;;  %v403_v17 = vrot.slane %v940_v2, %v892_v0  ;;  %v347_v18 = vrot.slane %v940_v2, %v890_v40 }
  0x6d   :  { %v968_v19 = vmul.f32 %v239_v12, %v952_v11  ;;  %v242_v20 = vmul.f32 2.0, %v241_v13  ;;  %v424_v21 = vsel %vm423_vm1, %v421_v5, %v280_v14  ;;  %v407_v22 = vrot.slane %v940_v2, %v899_v44 }
  0x6e   :  { %v425_v23 = vsel %vm423_vm1, %v422_v7, %v284_v15  ;;  %v503_v24 = vrot.slane %v952_v11, %v880_v33  ;;  %v643_v25 = vsel %vm420_vm0, %v481_v52, %v492_v8  ;;  %v507_v26 = vrot.slane %v952_v11, %v884_v37 }
  0x6f   :  { %v979_v27 = vsub.f32 1.0, %v242_v20  ;;  %v244_v28 = vmul.f32 2.0, %v968_v19  ;;  %v246_v4 = vmul.f32 %v968_v19, %v968_v19  ;;  %v291_v29 = vrot.slane %v968_v19, %v880_v33 }
  0x70   :  { %v295_v30 = vrot.slane %v968_v19, %v884_v37  ;;  %v353_v31 = vrot.slane %v968_v19, %v882_v36  ;;  %v413_v32 = vrot.slane %v968_v19, %v892_v0  ;;  %v357_v34 = vrot.slane %v968_v19, %v890_v40 }
  0x71   :  { %v245_v35 = vmul.f32 %v244_v28, %v979_v27  ;;  %v247_v41 = vmul.f32 2.0, %v246_v4  ;;  %v427_v42 = vsel %vm426_vm2, %v424_v21, %v291_v29  ;;  %v417_v43 = vrot.slane %v968_v19, %v899_v44 }
  0x72   :  { %v428_v46 = vsel %vm426_vm2, %v425_v23, %v295_v30  ;;  %v441_v50 = vsel %vm420_vm0, %v343_v16, %v353_v31  ;;  %v442_v52 = vsel %vm420_vm0, %v347_v18, %v357_v34  ;;  %v514_v58 = vrot.slane %v979_v27, %v880_v33 }
  0x73   :  { %v1003_v59 = vsub.f32 1.0, %v247_v41  ;;  %v249_v60 = vmul.f32 2.0, %v245_v35  ;;  %v302_v62 = vrot.slane %v245_v35, %v880_v33  ;;  %v306_v3 = vrot.slane %v245_v35, %v884_v37 }
  0x74   :  { %v363_v5 = vrot.slane %v245_v35, %v882_v36  ;;  %v367_v7 = vrot.slane %v245_v35, %v890_v40  ;;  %v458_v8 = vrot.slane %v245_v35, %v892_v0  ;;  %v462_v12 = vrot.slane %v245_v35, %v899_v44 }
  0x75   :  { %v250_v13 = vmul.f32 %v249_v60, %v1003_v59  ;;  %v430_v14 = vsel %vm429_vm3, %v427_v42, %v302_v62  ;;  %v431_v15 = vsel %vm429_vm3, %v428_v46, %v306_v3  ;;  %v251_v16 = vmul.f32 %v245_v35, %v245_v35 }
  0x76   :  { %v443_v18 = vsel %vm423_vm1, %v441_v50, %v363_v5  ;;  %v444_v19 = vsel %vm423_vm1, %v442_v52, %v367_v7  ;;  %v525_v20 = vrot.slane %v1003_v59, %v880_v33  ;;  %v645_v21 = vsel %vm423_vm1, %v643_v25, %v503_v24 }
  0x77   :  { %v313_v23 = vrot.slane %v250_v13, %v880_v33  ;;  %v317_v28 = vrot.slane %v250_v13, %v884_v37  ;;  %v373_v4 = vrot.slane %v250_v13, %v882_v36  ;;  %v377_v29 = vrot.slane %v250_v13, %v890_v40 }
  0x78   :  { %v468_v30 = vrot.slane %v250_v13, %v892_v0  ;;  %v472_v31 = vrot.slane %v250_v13, %v899_v44  ;;  %v252_v34 = vmul.f32 2.0, %v251_v16  ;;  %v647_v35 = vsel %vm426_vm2, %v645_v21, %v514_v58 }
  0x79   :  { %v433_v41 = vsel %vm432_vm4, %v430_v14, %v313_v23  ;;  %v434_v42 = vsel %vm432_vm4, %v431_v15, %v317_v28  ;;  %v445_v24 = vsel %vm426_vm2, %v443_v18, %v373_v4  ;;  %v446_v25 = vsel %vm426_vm2, %v444_v19, %v377_v29 }
  0x7a   :  { %v436_v46 = vsel %vm435_vm5, %v433_v41, %v323_v45  ;;  %v437_v50 = vsel %vm435_vm5, %v434_v42, %v327_v47  ;;  %v447_v52 = vsel %vm429_vm3, %v445_v24, %v383_v48  ;;  %v448_v58 = vsel %vm429_vm3, %v446_v25, %v387_v51 }
  0x7b   :  { %v439_v45 = vsel %vm438_vm6, %v436_v46, %v333_v61  ;;  %v440_v47 = vsel %vm438_vm6, %v437_v50, %v337_v63  ;;  %v449_v48 = vsel %vm432_vm4, %v447_v52, %v393_v1  ;;  %v450_v38 = vsel %vm432_vm4, %v448_v58, %v397_v6 }
  0x7c   :  { %693 = vst [vmem:[#allocation5] sm:$0xff] %v439_v45  ;;  %694 = vst [vmem:[#allocation5 + $0x8] sm:$0xff] %v440_v47  ;;  %v451_v51 = vsel %vm435_vm5, %v449_v48, %v403_v17  ;;  %v452_v61 = vsel %vm435_vm5, %v450_v38, %v407_v22  ;;  %v475_v63 = vsel %vm420_vm0, %v458_v8, %v468_v30  ;;  %v253_v60 = vsub.f32 1.0, %v252_v34 }
  0x7d   :  { %v476_v1 = vsel %vm420_vm0, %v462_v12, %v472_v31  ;;  %v453_v49 = vsel %vm438_vm6, %v451_v51, %v413_v32  ;;  %v454_v6 = vsel %vm438_vm6, %v452_v61, %v417_v43  ;;  %697 = vst [vmem:[#allocation5 + $0x20] sm:$0x3] %v475_v63  ;;  %v649_v62 = vsel %vm429_vm3, %v647_v35, %v525_v20 }
  0x7e   :  { %698 = vst [vmem:[#allocation5 + $0x28] sm:$0x3] %v476_v1  ;;  %695 = vst [vmem:[#allocation5 + $0x10] sm:$0xff] %v453_v49  ;;  %v518_v2 = vrot.slane %v979_v27, %v884_v37  ;;  %v529_v17 = vrot.slane %v1003_v59, %v884_v37  ;;  %v560_v22 = vrot.slane %v924_v57, %v890_v40 }
  0x7f   :  { %696 = vst [vmem:[#allocation5 + $0x18] sm:$0xff] %v454_v6  ;;  %v644_v32 = vsel %vm420_vm0, %v485_v54, %v496_v10  ;;  %v536_v43 = vrot.slane %v253_v60, %v880_v33  ;;  %v540_v3 = vrot.slane %v253_v60, %v884_v37  ;;  %v566_v7 = vrot.slane %v952_v11, %v882_v36 }
  0x80   :  { %v646_v5 = vsel %vm423_vm1, %v644_v32, %v507_v26  ;;  %v576_v12 = vrot.slane %v979_v27, %v882_v36  ;;  %v586_v54 = vrot.slane %v1003_v59, %v882_v36  ;;  %v596_v33 = vrot.slane %v253_v60, %v882_v36 }
  0x81   :  { %v648_v8 = vsel %vm426_vm2, %v646_v5, %v518_v2  ;;  %v651_v10 = vsel %vm432_vm4, %v649_v62, %v536_v43  ;;  %v616_v37 = vrot.slane %v924_v57, %v892_v0  ;;  %v626_v26 = vrot.slane %v952_v11, %v892_v0 }
  0x82   :  { %v650_v13 = vsel %vm429_vm3, %v648_v8, %v529_v17  ;;  %v653_v14 = vsel %vm435_vm5, %v651_v10, %v546_v53  ;;  %v636_v16 = vrot.slane %v979_v27, %v892_v0  ;;  %v657_v18 = vsel %vm420_vm0, %v566_v7, %v576_v12 }
  0x83   :  { %v652_v15 = vsel %vm432_vm4, %v650_v13, %v540_v3  ;;  %v655_v19 = vsel %vm438_vm6, %v653_v14, %v556_v9  ;;  %v659_v21 = vsel %vm423_vm1, %v657_v18, %v586_v54  ;;  %v570_v53 = vrot.slane %v952_v11, %v890_v40 }
  0x84   :  { %v654_v20 = vsel %vm435_vm5, %v652_v15, %v550_v55  ;;  %v705_v23 = vrot.slane %v655_v19, 6  ;;  %v661_v4 = vsel %vm426_vm2, %v659_v21, %v596_v33  ;;  %v580_v36 = vrot.slane %v979_v27, %v890_v40 }
  0x85   :  { %v656_v28 = vsel %vm438_vm6, %v654_v20, %v560_v22  ;;  %v663_v9 = vsel %vm429_vm3, %v661_v4, %v606_v56  ;;  %v590_v55 = vrot.slane %v1003_v59, %v890_v40  ;;  %v600_v30 = vrot.slane %v253_v60, %v890_v40 }
  0x86   :  { %v706_v29 = vrot.slane %v656_v28, 6  ;;  %721 = vst [vmem:[#allocation5 + $0x20] sm:$0xfc] %v705_v23  ;;  %v665_v31 = vsel %vm432_vm4, %v663_v9, %v616_v37  ;;  %v610_v34 = vrot.slane %v888_v39, %v899_v44  ;;  %v620_v35 = vrot.slane %v924_v57, %v899_v44 }
  0x87   :  { %v630_v41 = vrot.slane %v952_v11, %v899_v44  ;;  %v667_v56 = vsel %vm435_vm5, %v665_v31, %v626_v26  ;;  %v658_v42 = vsel %vm420_vm0, %v570_v53, %v580_v36  ;;  %v674_v40 = vrot.slane %v1003_v59, %v892_v0 }
  0x88   :  { %722 = vst [vmem:[#allocation5 + $0x28] sm:$0xfc] %v706_v29  ;;  %v684_v24 = vrot.slane %v253_v60, %v892_v0  ;;  %v669_v25 = vsel %vm438_vm6, %v667_v56, %v636_v16  ;;  %v660_v39 = vsel %vm423_vm1, %v658_v42, %v590_v55  ;;  %v678_v57 = vrot.slane %v1003_v59, %v899_v44 }
  0x89   :  { %v688_v46 = vrot.slane %v253_v60, %v899_v44  ;;  %v707_v11 = vrot.slane %v669_v25, 6  ;;  %v640_v50 = vrot.slane %v979_v27, %v899_v44  ;;  %v662_v52 = vsel %vm426_vm2, %v660_v39, %v600_v30 }
  0x8a   :  { %v691_v58 = vsel %vm420_vm0, %v674_v40, %v684_v24  ;;  %v664_v45 = vsel %vm429_vm3, %v662_v52, %v610_v34 }
  0x8b   :  { %v711_v0 = vrot.slane %v691_v58, 6  ;;  %v692_v47 = vsel %vm420_vm0, %v678_v57, %v688_v46  ;;  %v708_v48 = vsel %vm423_vm1, %v705_v23, %v707_v11  ;;  %v666_v38 = vsel %vm432_vm4, %v664_v45, %v620_v35 }
  0x8c   :  { %723 = vst [vmem:[#allocation5 + $0x30] sm:$0xff] %v708_v48  ;;  %v668_v59 = vsel %vm435_vm5, %v666_v38, %v630_v41  ;;  %v713_v27 = vrot.slane %v692_v47, 6 }
  0x8d   :  { %v712_v44 = vsel %vm423_vm1, %v707_v11, %v711_v0  ;;  %v670_v51 = vsel %vm438_vm6, %v668_v59, %v640_v50 }
  0x8e   :  { %725 = vst [vmem:[#allocation5 + $0x40] sm:$0xf] %v712_v44  ;;  %v709_v61 = vrot.slane %v670_v51, 6 }
  0x90   :  { %v710_v63 = vsel %vm423_vm1, %v706_v29, %v709_v61  ;;  %v714_v1 = vsel %vm423_vm1, %v709_v61, %v713_v27 }
  0x91   :  { %724 = vst [vmem:[#allocation5 + $0x38] sm:$0xff] %v710_v63  ;;  %726 = vst [vmem:[#allocation5 + $0x48] sm:$0xf] %v714_v1 }
  0x92   :  { %809 = shalt.err (!%p806_p12)
}
  0x93   :  { %s810_s22 = scalar_lea.hbm %s1181_s1, 1280 }
  0x94   :  { %p811_p13 = scmp.ne.s32.totalorder %s1181_s1, %s810_s22  ;;  %p814_p0 = scmp.lt.u32.totalorder %s810_s22, %s1181_s1 }
  0x96   :  { %p816_p1 = pnand %p814_p0, %p811_p13 }
  0x98   :  { %819 = shalt.err (!%p816_p1)
}
  0x99   :  { %s832_s27 = smov 256   ;;  %s833_s28 = smov 16  }
  0x9a   :  { %743 = dma.vmem_to_hbm [thread:$0]  %s738_s18, 1280, %s1181_s1, [#allocation4], %s832_s27, %s832_s27, %s833_s28  }
  0x9b   :  { %822 = dma.done.wait [#allocation4], 1280  }
  0x9c   :  { %823 = vsyncadd [#allocation4], 4294966016 }
  0x9d   :  { %747 = vsyncpa [#allocation3], 1 }
  0x9e   :  { %748 = vsyncpa [#allocation4], 1 }

</bundles_post_ra>
